<compile_context>
chip_gen: v7x
topology: tpu7x:2x2x1
jax: 0.10.0
libtpu: 0.0.40
codegen_flags: <defaults>
</compile_context>

<pallas_src>
import functools
import math

import jax
import jax.numpy as jnp
from jax.experimental import pallas as pl
from jax.experimental.pallas import tpu as pltpu

IN_F, H1, H2, H3, OUT_F = 5, 128, 256, 1024, 5
F_PAD = 128  # lane-dense padding for the 5-wide input/output feature dims


def _round_up(n, m):
    return ((n + m - 1) // m) * m


def generator_kernel(x_ref,
                     w1_ref, b1_ref,
                     w2_ref, b2_ref,
                     w3_ref, b3_ref,
                     w4_ref, b4_ref,
                     o_ref):
    # x tile: (TB, 128) f32 -> bf16 for the MXU; accumulate in f32 throughout.
    x = x_ref[...].astype(jnp.bfloat16)

    # Linear(5->128) + ReLU   (Dropout(0.2) is identity in eval mode)
    h = jnp.dot(x, w1_ref[...], preferred_element_type=jnp.float32) + b1_ref[...]
    h = jnp.maximum(h, 0.0)

    # Linear(128->256) + Tanh (Dropout(0.3) is identity in eval mode)
    h = jnp.dot(h.astype(jnp.bfloat16), w2_ref[...],
                preferred_element_type=jnp.float32) + b2_ref[...]
    h = jnp.tanh(h)

    # Linear(256->1024) + ReLU
    # TODO(synk): on v7x, w3 (the dominant weight) could be stored as fp8 for a
    # further 2x HBM-byte cut; skipped here pending an accuracy evaluation.
    h = jnp.dot(h.astype(jnp.bfloat16), w3_ref[...],
                preferred_element_type=jnp.float32) + b3_ref[...]
    h = jnp.maximum(h, 0.0)

    # Linear(1024->5), output zero-padded to 128 lanes.
    o_ref[...] = (jnp.dot(h.astype(jnp.bfloat16), w4_ref[...],
                          preferred_element_type=jnp.float32)
                  + b4_ref[...]).astype(o_ref.dtype)


def init_linear(key, fan_in, fan_out):
    # PyTorch nn.Linear default init: U(-1/sqrt(fan_in), 1/sqrt(fan_in)).
    # Weights stored transposed vs. PyTorch as (in_features, out_features).
    kw, kb = jax.random.split(key)
    bound = 1.0 / math.sqrt(fan_in)
    w = jax.random.uniform(kw, (fan_in, fan_out), jnp.float32, -bound, bound)
    b = jax.random.uniform(kb, (1, fan_out), jnp.float32, -bound, bound)
    return w, b


def prepare_params(params):
    """Pad the 5-wide dims to 128 lanes and cast weights to bf16 (biases f32)."""
    (w1, b1), (w2, b2), (w3, b3), (w4, b4) = params
    w1p = jnp.zeros((F_PAD, H1), jnp.float32).at[:IN_F, :].set(w1)
    w4p = jnp.zeros((H3, F_PAD), jnp.float32).at[:, :OUT_F].set(w4)
    b4p = jnp.zeros((1, F_PAD), jnp.float32).at[:, :OUT_F].set(b4)
    return (w1p.astype(jnp.bfloat16), b1,
            w2.astype(jnp.bfloat16), b2,
            w3.astype(jnp.bfloat16), b3,
            w4p.astype(jnp.bfloat16), b4p)


@functools.partial(jax.jit, static_argnames=("tile_b",))
def generator_forward(x, prepared, *, tile_b=256):
    w1, b1, w2, b2, w3, b3, w4, b4 = prepared
    B = x.shape[0]
    TB = max(8, min(tile_b, _round_up(B, 8)))     # batch tile (multiple of 8)
    B_pad = _round_up(B, TB)

    # Zero-pad batch to a multiple of TB and features 5 -> 128 (lane-dense).
    x_p = jnp.zeros((B_pad, F_PAD), jnp.float32).at[:B, :IN_F].set(x)

    const = lambda i: (0, 0)                      # weights: VMEM-resident
    in_specs = [
        pl.BlockSpec((TB, F_PAD), lambda i: (i, 0)),   # x tile
        pl.BlockSpec((F_PAD, H1), const),
        pl.BlockSpec((1, H1), const),
        pl.BlockSpec((H1, H2), const),
        pl.BlockSpec((1, H2), const),
        pl.BlockSpec((H2, H3), const),
        pl.BlockSpec((1, H3), const),
        pl.BlockSpec((H3, F_PAD), const),
        pl.BlockSpec((1, F_PAD), const),
    ]
    out_specs = pl.BlockSpec((TB, F_PAD), lambda i: (i, 0))

    flops = 2 * B_pad * (F_PAD * H1 + H1 * H2 + H2 * H3 + H3 * F_PAD)
    weight_bytes = 2 * (F_PAD * H1 + H1 * H2 + H2 * H3 + H3 * F_PAD)  # bf16
    bias_bytes = 4 * (H1 + H2 + H3 + F_PAD)
    io_bytes = 4 * B_pad * (F_PAD + F_PAD)
    cost = pl.CostEstimate(flops=flops,
                           transcendentals=B_pad * H2,
                           bytes_accessed=weight_bytes + bias_bytes + io_bytes)

    out = pl.pallas_call(
        generator_kernel,
        out_shape=jax.ShapeDtypeStruct((B_pad, F_PAD), jnp.float32),
        grid_spec=pltpu.PrefetchScalarGridSpec(
            num_scalar_prefetch=0,
            grid=(B_pad // TB,),
            in_specs=in_specs,
            out_specs=out_specs,
        ),
        compiler_params=pltpu.CompilerParams(
            dimension_semantics=("parallel",),   # v7x: shard batch over 2 TCs
            vmem_limit_bytes=48 * 1024 * 1024),
        cost_estimate=cost,
    )(x_p, w1, b1, w2, b2, w3, b3, w4, b4)

    return out[:B, :OUT_F]


if __name__ == "__main__":
    key = jax.random.PRNGKey(0)
    kx, k1, k2, k3, k4 = jax.random.split(key, 5)

    B = 24  # small test batch; use tile_b=8 so the batch grid has 3 steps
    x = jax.random.normal(kx, (B, IN_F), jnp.float32)

    params = (
        init_linear(k1, IN_F, H1),
        init_linear(k2, H1, H2),
        init_linear(k3, H2, H3),
        init_linear(k4, H3, OUT_F),
    )
    prepared = prepare_params(params)

    # TODO(synk): Dropout layers are implemented as identity (PyTorch eval-mode
    # semantics); training-mode stochastic masking would need pltpu.prng_*.
    out = generator_forward(x, prepared, tile_b=8)
    jax.block_until_ready(out)

    # Plain-JAX f32 reference of the same forward pass (kernel uses bf16
    # matmul operands with f32 accumulation, hence the loosened tolerance).
    def ref_forward(x, params):
        (w1, b1), (w2, b2), (w3, b3), (w4, b4) = params
        h = jnp.maximum(x @ w1 + b1, 0.0)
        h = jnp.tanh(h @ w2 + b2)
        h = jnp.maximum(h @ w3 + b3, 0.0)
        return h @ w4 + b4

    expected = ref_forward(x, params)
    assert out.shape == (B, OUT_F), out.shape
    max_err = float(jnp.max(jnp.abs(out - expected)))
    assert jnp.allclose(out, expected, atol=3e-2, rtol=3e-2), max_err
    print("KERNEL_OK")
</pallas_src>

<mosaic_0001>
module attributes {stable_mosaic.version = 11 : i64} {
  func.func @generator_kernel(%arg0: i32, %arg1: memref<8x128xf32, #tpu.memory_space<vmem>>, %arg2: memref<128x128xbf16, #tpu.memory_space<vmem>>, %arg3: memref<1x128xf32, #tpu.memory_space<vmem>>, %arg4: memref<128x256xbf16, #tpu.memory_space<vmem>>, %arg5: memref<1x256xf32, #tpu.memory_space<vmem>>, %arg6: memref<256x1024xbf16, #tpu.memory_space<vmem>>, %arg7: memref<1x1024xf32, #tpu.memory_space<vmem>>, %arg8: memref<1024x128xbf16, #tpu.memory_space<vmem>>, %arg9: memref<1x128xf32, #tpu.memory_space<vmem>>, %arg10: memref<8x128xf32, #tpu.memory_space<vmem>>) attributes {dimension_semantics = [#tpu.dimension_semantics<parallel>], iteration_bounds = array<i64: 3>, scalar_prefetch = 0 : i64, scratch_operands = 0 : i64, tpu.core_type = #tpu.core_type<tc>, window_params = [{transform_indices = @transform_0, window_bounds = array<i64: 8, 128>}, {pipeline_mode = #tpu.pipeline_mode<synchronous>, transform_indices = @transform_1, window_bounds = array<i64: 128, 128>}, {pipeline_mode = #tpu.pipeline_mode<synchronous>, transform_indices = @transform_2, window_bounds = array<i64: 1, 128>}, {pipeline_mode = #tpu.pipeline_mode<synchronous>, transform_indices = @transform_3, window_bounds = array<i64: 128, 256>}, {pipeline_mode = #tpu.pipeline_mode<synchronous>, transform_indices = @transform_4, window_bounds = array<i64: 1, 256>}, {pipeline_mode = #tpu.pipeline_mode<synchronous>, transform_indices = @transform_5, window_bounds = array<i64: 256, 1024>}, {pipeline_mode = #tpu.pipeline_mode<synchronous>, transform_indices = @transform_6, window_bounds = array<i64: 1, 1024>}, {pipeline_mode = #tpu.pipeline_mode<synchronous>, transform_indices = @transform_7, window_bounds = array<i64: 1024, 128>}, {pipeline_mode = #tpu.pipeline_mode<synchronous>, transform_indices = @transform_8, window_bounds = array<i64: 1, 128>}, {transform_indices = @transform_9, window_bounds = array<i64: 8, 128>}]} {
    %c0 = arith.constant 0 : index
    %c0_0 = arith.constant 0 : index
    %0 = vector.load %arg1[%c0, %c0_0] : memref<8x128xf32, #tpu.memory_space<vmem>>, vector<8x128xf32>
    %1 = arith.truncf %0 : vector<8x128xf32> to vector<8x128xbf16>
    %c0_1 = arith.constant 0 : index
    %c0_2 = arith.constant 0 : index
    %2 = vector.load %arg2[%c0_1, %c0_2] : memref<128x128xbf16, #tpu.memory_space<vmem>>, vector<128x128xbf16>
    %cst = arith.constant dense<0.000000e+00> : vector<8x128xf32>
    %3 = tpu.matmul %1, %2, %cst {dimension_numbers = #tpu.dot_dimension_numbers<[1], [0], [0], [1], [0, 0, 1, 1], [], []>} : vector<8x128xbf16>, vector<128x128xbf16>, vector<8x128xf32> -> vector<8x128xf32>
    %c0_3 = arith.constant 0 : index
    %c0_4 = arith.constant 0 : index
    %4 = vector.load %arg3[%c0_3, %c0_4] : memref<1x128xf32, #tpu.memory_space<vmem>>, vector<1x128xf32>
    %5 = vector.broadcast %4 : vector<1x128xf32> to vector<8x128xf32>
    %6 = arith.addf %3, %5 : vector<8x128xf32>
    %cst_5 = arith.constant 0.000000e+00 : f32
    %7 = vector.broadcast %cst_5 : f32 to vector<8x128xf32>
    %8 = arith.maximumf %6, %7 : vector<8x128xf32>
    %9 = arith.truncf %8 : vector<8x128xf32> to vector<8x128xbf16>
    %c0_6 = arith.constant 0 : index
    %c0_7 = arith.constant 0 : index
    %10 = vector.load %arg4[%c0_6, %c0_7] : memref<128x256xbf16, #tpu.memory_space<vmem>>, vector<128x256xbf16>
    %cst_8 = arith.constant dense<0.000000e+00> : vector<8x256xf32>
    %11 = tpu.matmul %9, %10, %cst_8 {dimension_numbers = #tpu.dot_dimension_numbers<[1], [0], [0], [1], [0, 0, 1, 1], [], []>} : vector<8x128xbf16>, vector<128x256xbf16>, vector<8x256xf32> -> vector<8x256xf32>
    %c0_9 = arith.constant 0 : index
    %c0_10 = arith.constant 0 : index
    %12 = vector.load %arg5[%c0_9, %c0_10] : memref<1x256xf32, #tpu.memory_space<vmem>>, vector<1x256xf32>
    %13 = vector.broadcast %12 : vector<1x256xf32> to vector<8x256xf32>
    %14 = arith.addf %11, %13 : vector<8x256xf32>
    %15 = math.tanh %14 : vector<8x256xf32>
    %16 = arith.truncf %15 : vector<8x256xf32> to vector<8x256xbf16>
    %c0_11 = arith.constant 0 : index
    %c0_12 = arith.constant 0 : index
    %17 = vector.load %arg6[%c0_11, %c0_12] : memref<256x1024xbf16, #tpu.memory_space<vmem>>, vector<256x1024xbf16>
    %cst_13 = arith.constant dense<0.000000e+00> : vector<8x1024xf32>
    %18 = tpu.matmul %16, %17, %cst_13 {dimension_numbers = #tpu.dot_dimension_numbers<[1], [0], [0], [1], [0, 0, 1, 1], [], []>} : vector<8x256xbf16>, vector<256x1024xbf16>, vector<8x1024xf32> -> vector<8x1024xf32>
    %c0_14 = arith.constant 0 : index
    %c0_15 = arith.constant 0 : index
    %19 = vector.load %arg7[%c0_14, %c0_15] : memref<1x1024xf32, #tpu.memory_space<vmem>>, vector<1x1024xf32>
    %20 = vector.broadcast %19 : vector<1x1024xf32> to vector<8x1024xf32>
    %21 = arith.addf %18, %20 : vector<8x1024xf32>
    %cst_16 = arith.constant 0.000000e+00 : f32
    %22 = vector.broadcast %cst_16 : f32 to vector<8x1024xf32>
    %23 = arith.maximumf %21, %22 : vector<8x1024xf32>
    %24 = arith.truncf %23 : vector<8x1024xf32> to vector<8x1024xbf16>
    %c0_17 = arith.constant 0 : index
    %c0_18 = arith.constant 0 : index
    %25 = vector.load %arg8[%c0_17, %c0_18] : memref<1024x128xbf16, #tpu.memory_space<vmem>>, vector<1024x128xbf16>
    %cst_19 = arith.constant dense<0.000000e+00> : vector<8x128xf32>
    %26 = tpu.matmul %24, %25, %cst_19 {dimension_numbers = #tpu.dot_dimension_numbers<[1], [0], [0], [1], [0, 0, 1, 1], [], []>} : vector<8x1024xbf16>, vector<1024x128xbf16>, vector<8x128xf32> -> vector<8x128xf32>
    %c0_20 = arith.constant 0 : index
    %c0_21 = arith.constant 0 : index
    %27 = vector.load %arg9[%c0_20, %c0_21] : memref<1x128xf32, #tpu.memory_space<vmem>>, vector<1x128xf32>
    %28 = vector.broadcast %27 : vector<1x128xf32> to vector<8x128xf32>
    %29 = arith.addf %26, %28 : vector<8x128xf32>
    %c0_22 = arith.constant 0 : index
    %c0_23 = arith.constant 0 : index
    %30 = vector.load %arg10[%c0_22, %c0_23] : memref<8x128xf32, #tpu.memory_space<vmem>>, vector<8x128xf32>
    tpu.vector_store %arg10[%c0_22, %c0_23], %29 {strides = array<i32>} : memref<8x128xf32, #tpu.memory_space<vmem>>, vector<8x128xf32>,
    return
  }
  func.func @transform_0(%arg0: i32) -> (i32, i32) {
    %c0_i32 = arith.constant 0 : i32
    %c0_i32_0 = arith.constant 0 : i32
    return %arg0, %c0_i32 : i32, i32
  }
  func.func @transform_1(%arg0: i32) -> (i32, i32) {
    %c0_i32 = arith.constant 0 : i32
    %c0_i32_0 = arith.constant 0 : i32
    %c0_i32_1 = arith.constant 0 : i32
    return %c0_i32, %c0_i32_0 : i32, i32
  }
  func.func @transform_2(%arg0: i32) -> (i32, i32) {
    %c0_i32 = arith.constant 0 : i32
    %c0_i32_0 = arith.constant 0 : i32
    %c0_i32_1 = arith.constant 0 : i32
    return %c0_i32, %c0_i32_0 : i32, i32
  }
  func.func @transform_3(%arg0: i32) -> (i32, i32) {
    %c0_i32 = arith.constant 0 : i32
    %c0_i32_0 = arith.constant 0 : i32
    %c0_i32_1 = arith.constant 0 : i32
    return %c0_i32, %c0_i32_0 : i32, i32
  }
  func.func @transform_4(%arg0: i32) -> (i32, i32) {
    %c0_i32 = arith.constant 0 : i32
    %c0_i32_0 = arith.constant 0 : i32
    %c0_i32_1 = arith.constant 0 : i32
    return %c0_i32, %c0_i32_0 : i32, i32
  }
  func.func @transform_5(%arg0: i32) -> (i32, i32) {
    %c0_i32 = arith.constant 0 : i32
    %c0_i32_0 = arith.constant 0 : i32
    %c0_i32_1 = arith.constant 0 : i32
    return %c0_i32, %c0_i32_0 : i32, i32
  }
  func.func @transform_6(%arg0: i32) -> (i32, i32) {
    %c0_i32 = arith.constant 0 : i32
    %c0_i32_0 = arith.constant 0 : i32
    %c0_i32_1 = arith.constant 0 : i32
    return %c0_i32, %c0_i32_0 : i32, i32
  }
  func.func @transform_7(%arg0: i32) -> (i32, i32) {
    %c0_i32 = arith.constant 0 : i32
    %c0_i32_0 = arith.constant 0 : i32
    %c0_i32_1 = arith.constant 0 : i32
    return %c0_i32, %c0_i32_0 : i32, i32
  }
  func.func @transform_8(%arg0: i32) -> (i32, i32) {
    %c0_i32 = arith.constant 0 : i32
    %c0_i32_0 = arith.constant 0 : i32
    %c0_i32_1 = arith.constant 0 : i32
    return %c0_i32, %c0_i32_0 : i32, i32
  }
  func.func @transform_9(%arg0: i32) -> (i32, i32) {
    %c0_i32 = arith.constant 0 : i32
    %c0_i32_0 = arith.constant 0 : i32
    return %arg0, %c0_i32 : i32, i32
  }
}

</mosaic_0001>

<bundles_post_ra>
// kernel: generator_forward.1
= control target key start
LH: loop header
LB: loop body
LE: loop exit
PB: predicated region body
PF: predicated region fallthrough
CT: control target
= control target key end

     0   :  { %14 = vsyncpa [#allocation3], 0  ;;  %s3284_s0 = inlined_call_operand.vmem [shape: f32[24,128], index: 0, kind: input, shape index: {}]   ;;  %s3285_s1 = inlined_call_operand.hbm [shape: bf16[128,128], index: 1, kind: input, shape index: {}]   ;;  %s3286_s2 = inlined_call_operand.vmem [shape: f32[1,128], index: 2, kind: input, shape index: {}]   ;;  %s3287_s3 = inlined_call_operand.vmem [shape: bf16[128,256], index: 3, kind: input, shape index: {}]   ;;  %s3288_s4 = inlined_call_operand.vmem [shape: f32[1,256], index: 4, kind: input, shape index: {}]   ;;  %s3289_s5 = inlined_call_operand.hbm [shape: bf16[256,1024], index: 5, kind: input, shape index: {}]   ;;  %s3290_s6 = inlined_call_operand.vmem [shape: f32[1,1024], index: 6, kind: input, shape index: {}]   ;;  %s3291_s7 = inlined_call_operand.hbm [shape: bf16[1024,128], index: 7, kind: input, shape index: {}]   ;;  %s3292_s8 = inlined_call_operand.vmem [shape: f32[1,128], index: 8, kind: input, shape index: {}]   ;;  %s3293_s9 = inlined_call_operand.vmem [shape: f32[24,128], index: 9, kind: output, shape index: {}]  }
   0x1   :  { %15 = vsyncpa [#allocation5], 0  ;;  %s3051_s30 = smov 0  }
   0x2 LB: > { %s2991_s10 = smov [#allocation4]   ;;  %s3057_s12 = sadd.s32 4294967295, %s2989_s30   ;;  %s2989_s30 = sphi %s3051_s30, %s21_s30  }
   0x3   : > { %s280_s11 = sshll.u32 %s2991_s10, 4  ;;  %p2397_p0 = scmp.ge.s32.totalorder %s2989_s30, 1  ;;  %s3066_s11 = int_to_ptr.vmem [resolvable:$true] %s280_s11 }
   0x4   : > { %p246_p1 = scmp.lt.s32.totalorder %s2989_s30, 4  ;;  %p3294_p2 = scmp.eq.s32.totalorder %s3057_s12, 0 }
   0x5   : > { %s2992_s14 = smov [#allocation2]   ;;  %s2993_s17 = smov [#allocation6]  }
   0x6   : > { %p3062_p3 = pnand %p2397_p0, %p246_p1  ;;  %s258_s15 = sshll.u32 %s2992_s14, 4  ;;  %s3070_s15 = int_to_ptr.vmem [resolvable:$true] %s258_s15 }
   0x7   : > { %s3078_s18 = sshll.u32 %s2993_s17, 4  ;;  %s2891_s21 = scalar_lea.hbm %s3289_s5, 16384  ;;  %s297_s18 = int_to_ptr.vmem [resolvable:$true] %s3078_s18 }
   0x8   : > { %s3296_s13 = scalar_select %p3062_p3, 1, 0 }
   0x9   : > { %p2757_p4 = pneg %p3062_p3  ;;  %p2892_p6 = scmp.ne.s32.totalorder %s3289_s5, %s2891_s21 }
   0xa   : > { %p2898_p10 = scmp.lt.u32.totalorder %s2891_s21, %s3289_s5 }
   0xb   : > { %p3074_p5 = pnand %p3294_p2, %p2757_p4 }
   0xd   : > { %p3088_p7 = pneg %p3074_p5 }
   0xf   : > { %p2894_p8 = pnand %p3088_p7, %p2892_p6 }
  0x11   : > { %p2895_p9 = pneg %p2894_p8 }
  0x13   : > { %p2900_p11 = pnand %p2898_p10, %p2895_p9 }
  0x15   : > { %2903 = shalt.err (!%p2900_p11)
}
  0x16   : > { %s2904_s27 = scalar_lea.vmem %s3066_s11, 16384  ;;  %p2912_p1 = scmp.lt.s32.totalorder %s3066_s11, %s3066_s11 }
  0x17   : > { %p2905_p12 = scmp.ne.s32.totalorder %s3066_s11, %s2904_s27  ;;  %p2913_p4 = scmp.lt.s32.totalorder %s2904_s27, %s2904_s27 }
  0x19   : > { %p2907_p13 = pnand %p2905_p12, %p3088_p7  ;;  %p2914_p6 = por %p2913_p4, %p2912_p1 }
  0x1b   : > { %p2908_p0 = pneg %p2907_p13 }
  0x1d   : > { %p2915_p8 = pnand %p2914_p6, %p2908_p0 }
  0x1f   : > { %2918 = shalt.err (!%p2915_p8)
}
  0x20   : > { %s2994_s28 = smov 512   ;;  %s2995_s29 = smov 32  }
  0x21   : > { %2763 = dma.hbm_to_vmem [thread:$0]  (!%p3074_p5), %s3289_s5, 16384, %s3066_s11, [#allocation5], %s2994_s28, %s2994_s28, %s2995_s29  }
  0x22   : > { %s2919_s20 = scalar_lea.hbm %s3285_s1, 1024 }
  0x23   : > { %p2920_p9 = scmp.ne.s32.totalorder %s3285_s1, %s2919_s20  ;;  %p2926_p12 = scmp.lt.u32.totalorder %s2919_s20, %s3285_s1 }
  0x25   : > { %p2922_p10 = pnand %p2920_p9, %p3088_p7 }
  0x27   : > { %p2923_p11 = pneg %p2922_p10 }
  0x29   : > { %p2928_p13 = pnand %p2926_p12, %p2923_p11 }
  0x2b   : > { %2931 = shalt.err (!%p2928_p13)
}
  0x2c   : > { %s2932_s11 = scalar_lea.vmem %s3070_s15, 1024  ;;  %p2940_p6 = scmp.lt.s32.totalorder %s3070_s15, %s3070_s15 }
  0x2d   : > { %p2933_p0 = scmp.ne.s32.totalorder %s3070_s15, %s2932_s11  ;;  %p2941_p8 = scmp.lt.s32.totalorder %s2932_s11, %s2932_s11 }
  0x2f   : > { %p2935_p1 = pnand %p2933_p0, %p3088_p7  ;;  %p2942_p9 = por %p2941_p8, %p2940_p6 }
  0x31   : > { %p2936_p4 = pneg %p2935_p1 }
  0x33   : > { %p2943_p10 = pnand %p2942_p9, %p2936_p4 }
  0x35   : > { %2946 = shalt.err (!%p2943_p10)
}
  0x36   : > { %s2996_s26 = smov 64   ;;  %s2997_s27 = smov 4  }
  0x37   : > { %2760 = dma.hbm_to_vmem [thread:$0]  (!%p3074_p5), %s3285_s1, 1024, %s3070_s15, [#allocation3], %s2996_s26, %s2996_s26, %s2997_s27  }
  0x38   : > { %s2947_s17 = scalar_lea.hbm %s3291_s7, 8192 }
  0x39   : > { %p2948_p11 = scmp.ne.s32.totalorder %s3291_s7, %s2947_s17  ;;  %p2954_p0 = scmp.lt.u32.totalorder %s2947_s17, %s3291_s7 }
  0x3b   : > { %p2950_p12 = pnand %p2948_p11, %p3088_p7 }
  0x3d   : > { %p2951_p13 = pneg %p2950_p12 }
  0x3f   : > { %p2956_p1 = pnand %p2954_p0, %p2951_p13 }
  0x41   : > { %2959 = shalt.err (!%p2956_p1)
}
  0x42   : > { %s2960_s23 = scalar_lea.vmem %s297_s18, 8192  ;;  %p2968_p9 = scmp.lt.s32.totalorder %s297_s18, %s297_s18 }
  0x43   : > { %p2961_p4 = scmp.ne.s32.totalorder %s297_s18, %s2960_s23  ;;  %p2969_p10 = scmp.lt.s32.totalorder %s2960_s23, %s2960_s23 }
  0x45   : > { %p2963_p6 = pnand %p2961_p4, %p3088_p7  ;;  %p2970_p2 = por %p2969_p10, %p2968_p9 }
  0x47   : > { %p2964_p8 = pneg %p2963_p6 }
  0x49   : > { %p2971_p3 = pnand %p2970_p2, %p2964_p8 }
  0x4b   : > { %2974 = shalt.err (!%p2971_p3)
}
  0x4c   : > { %2766 = dma.hbm_to_vmem [thread:$0]  (!%p3074_p5), %s3291_s7, 8192, %s297_s18, [#allocation5], %s2996_s26, %s2996_s26, %s2997_s27  }
  0x4d   : > { %p3299_p11 = scmp.ne.s32.totalorder %s3296_s13, 0 }
  0x4e   : > { %p3300_p12 = scmp.eq.s32.totalorder (!%p3299_p11), %s3057_s12, 0 }
  0x4f   : > { %322 = sbr.rel (%p3299_p11) target bundleno = 1075 (0x433), region = 56 }
  0x56   : > { %2980 = dma.done.wait (%p3300_p12), [#allocation3], 1024   ;;  %p3301_p7 = pmov %p3300_p12 }
  0x58   : > { %2982 = vsyncadd (%p3301_p7), [#allocation3], 4294966272  ;;  %p3302_p13 = pmov %p3301_p7 }
  0x59   : > { %p3303_p2 = pmov %p3301_p7 }
  0x5a   : > { %2984 = dma.done.wait (%p3302_p13), [#allocation5], 24576  }
  0x5b   : > { %2986 = vsyncadd (%p3303_p2), [#allocation5], 4294942720  ;;  %v2998_v0 = vmov 0.0   ;;  %vm2999_vm0 = vmmov 0   ;;  %v2791_v1 = vld [vmem:[#allocation2] sm:$0xff]   ;;  %v2792_v2 = vld [vmem:[#allocation2 + $0x8] sm:$0xff]  }
  0x5c   : > { %2725 = vmatprep.subr.bf16.mxu0 %v2998_v0  ;;  %2741 = vmatprep.mubr.msk.bf16.mxu0 %vm2999_vm0, %v2998_v0  ;;  %v2793_v3 = vld [vmem:[#allocation2 + $0x10] sm:$0xff]   ;;  %v2799_v4 = vld [vmem:[%s3287_s3 + $0x4] ss:$8 sps:$4 sm:$0xff]   ;;  %v2801_v5 = vld [vmem:[%s3287_s3] ss:$8 sps:$4 sm:$0xff]   ;;  %p364_p3 = scmp.lt.s32.totalorder %s3057_s12, 2 }
  0x5d   : > { %2726 = vmatpush3.bf16.msra.mxu0 %v2791_v1  ;;  %v2794_v6 = vld [vmem:[#allocation2 + $0x18] sm:$0xff]   ;;  %596 = vmatprep.subr.bf16.mxu1 %v2799_v4  ;;  %v2805_v9 = vld [vmem:[%s3287_s3 + $0x24] ss:$8 sps:$4 sm:$0xff]   ;;  %v2807_v11 = vld [vmem:[%s3287_s3 + $0x20] ss:$8 sps:$4 sm:$0xff]   ;;  %v3000_v27 = vmov 0  }
  0x5e   : > { %2727 = vmatprep.subr.bf16.mxu0 %v2998_v0  ;;  %v2802_v7 = vld [vmem:[%s3287_s3 + $0x14] ss:$8 sps:$4 sm:$0xff]   ;;  %597 = vmatpush1.bf16.msra.mxu1 %v2801_v5  ;;  %v2804_v8 = vld [vmem:[%s3287_s3 + $0x10] ss:$8 sps:$4 sm:$0xff]   ;;  %v2795_v10 = vld [vmem:[#allocation2 + $0x20] sm:$0xff]   ;;  %s3305_s12 = smov (!%p364_p3, %s3057_s12), 2 }
  0x5f   : > { %598 = vmatprep.subr.bf16.mxu1 %v2802_v7  ;;  %v2796_v12 = vld [vmem:[#allocation2 + $0x28] sm:$0xff]   ;;  %v2808_v13 = vld [vmem:[%s3287_s3 + $0x34] ss:$8 sps:$4 sm:$0xff]   ;;  %s2406_s21 = sshll.u32 %s3305_s12, 3  ;;  %v2810_v14 = vld [vmem:[%s3287_s3 + $0x30] ss:$8 sps:$4 sm:$0xff]   ;;  %628 = vmatprep.mubr.bf16.mxu1 %v3000_v27 }
  0x60   : > { %v2811_v15 = vld [vmem:[%s3287_s3 + $0x44] ss:$8 sps:$4 sm:$0xff]   ;;  %v2797_v16 = vld [vmem:[#allocation2 + $0x30] sm:$0xff]   ;;  %s367_s18 = scalar_lea.vmem %s3284_s0, %s2406_s21  ;;  %v2813_v17 = vld [vmem:[%s3287_s3 + $0x40] ss:$8 sps:$4 sm:$0xff]   ;;  %s371_s10 = scalar_lea.vmem %s3293_s9, %s2406_s21 }
  0x61   : > { %2728 = vmatpush3.bf16.msra.mxu0 %v2792_v2  ;;  %v2814_v18 = vld [vmem:[%s3287_s3 + $0x54] ss:$8 sps:$4 sm:$0xff]   ;;  %v373_v20 = vld [vmem:[%s367_s18] sm:$0xff]  ;;  %v2816_v21 = vld [vmem:[%s3287_s3 + $0x50] ss:$8 sps:$4 sm:$0xff]  }
  0x62   : > { %2729 = vmatprep.subr.bf16.mxu0 %v2998_v0  ;;  %599 = vmatpush1.bf16.msra.mxu1 %v2804_v8  ;;  %v2798_v19 = vld [vmem:[#allocation2 + $0x38] sm:$0xff]   ;;  %v2817_v22 = vld [vmem:[%s3287_s3 + $0x64] ss:$8 sps:$4 sm:$0xff]   ;;  %v374_v23 = vpack.c.bf16 %v373_v20, %v373_v20  ;;  %v2819_v24 = vld [vmem:[%s3287_s3 + $0x60] ss:$8 sps:$4 sm:$0xff]  }
  0x63   : > { %600 = vmatprep.subr.bf16.mxu1 %v2805_v9  ;;  %v2820_v25 = vld [vmem:[%s3287_s3 + $0x74] ss:$8 sps:$4 sm:$0xff]   ;;  %v2822_v26 = vld [vmem:[%s3287_s3 + $0x70] ss:$8 sps:$4 sm:$0xff]   ;;  %v641_v28 = vld [vmem:[#allocation4] sm:$0xff] }
  0x64   : > { %v645_v29 = vld [vmem:[#allocation4 + $0x20] sm:$0xff]  ;;  %v3219_v30 = vld [vmem:[#allocation4 + $0x8] sm:$0xff] }
  0x65   : > { %2730 = vmatpush3.bf16.msra.mxu0 %v2793_v3  ;;  %v2433_v31 = vcombine.low %v641_v28, %v645_v29  ;;  %v2434_v32 = vcombine.high %v641_v28, %v645_v29  ;;  %v3221_v33 = vld [vmem:[#allocation4 + $0x28] sm:$0xff]  ;;  %v649_v34 = vld [vmem:[#allocation4 + $0x40] sm:$0xff] }
  0x66   : > { %2731 = vmatprep.subr.bf16.mxu0 %v2998_v0  ;;  %601 = vmatpush1.bf16.msra.mxu1 %v2807_v11  ;;  %v653_v35 = vld [vmem:[#allocation4 + $0x60] sm:$0xff]  ;;  %v2435_v36 = vcombine.low %v3219_v30, %v3221_v33  ;;  %v2436_v37 = vcombine.high %v3219_v30, %v3221_v33  ;;  %v658_v27 = vld [vmem:[#allocation4 + $0x88] sm:$0xff] }
  0x67   : > { %602 = vmatprep.subr.bf16.mxu1 %v2808_v13  ;;  %v2442_v38 = vcombine.high %v649_v34, %v653_v35  ;;  %v2441_v39 = vcombine.low %v649_v34, %v653_v35  ;;  %v657_v40 = vld [vmem:[#allocation4 + $0x80] sm:$0xff]  ;;  %v662_v28 = vld [vmem:[#allocation4 + $0xa8] sm:$0xff] }
  0x68   : > { %v661_v41 = vld [vmem:[#allocation4 + $0xa0] sm:$0xff]  ;;  %v670_v34 = vld [vmem:[#allocation4 + $0xe8] sm:$0xff]  ;;  %v2451_v35 = vcombine.low %v658_v27, %v662_v28 }
  0x69   : > { %2732 = vmatpush3.bf16.msra.mxu0 %v2794_v6  ;;  %v2450_v42 = vcombine.high %v657_v40, %v661_v41  ;;  %v2449_v43 = vcombine.low %v657_v40, %v661_v41  ;;  %v665_v44 = vld [vmem:[#allocation4 + $0xc0] sm:$0xff] }
  0x6a   : > { %2733 = vmatprep.subr.bf16.mxu0 %v2998_v0  ;;  %603 = vmatpush1.bf16.msra.mxu1 %v2810_v14  ;;  %v669_v45 = vld [vmem:[#allocation4 + $0xe0] sm:$0xff] }
  0x6b   : > { %604 = vmatprep.subr.bf16.mxu1 %v2811_v15  ;;  %v2458_v46 = vcombine.high %v665_v44, %v669_v45  ;;  %v2457_v47 = vcombine.low %v665_v44, %v669_v45  ;;  %v673_v48 = vld [vmem:[#allocation4 + $0x100] sm:$0xff]  ;;  %v694_v44 = vld [vmem:[#allocation4 + $0x1a8] sm:$0xff] }
  0x6c   : > { %v677_v49 = vld [vmem:[#allocation4 + $0x120] sm:$0xff] }
  0x6d   : > { %2734 = vmatpush3.bf16.msra.mxu0 %v2795_v10  ;;  %v2466_v50 = vcombine.high %v673_v48, %v677_v49  ;;  %v2465_v51 = vcombine.low %v673_v48, %v677_v49  ;;  %v681_v52 = vld [vmem:[#allocation4 + $0x140] sm:$0xff]  ;;  %v702_v48 = vld [vmem:[#allocation4 + $0x1e8] sm:$0xff] }
  0x6e   : > { %2735 = vmatprep.subr.bf16.mxu0 %v2998_v0  ;;  %605 = vmatpush1.bf16.msra.mxu1 %v2813_v17  ;;  %v685_v53 = vld [vmem:[#allocation4 + $0x160] sm:$0xff] }
  0x6f   : > { %606 = vmatprep.subr.bf16.mxu1 %v2814_v18  ;;  %v2474_v54 = vcombine.high %v681_v52, %v685_v53  ;;  %v2473_v55 = vcombine.low %v681_v52, %v685_v53  ;;  %v689_v56 = vld [vmem:[#allocation4 + $0x180] sm:$0xff]  ;;  %v710_v52 = vld [vmem:[#allocation4 + $0x228] sm:$0xff] }
  0x70   : > { %v693_v57 = vld [vmem:[#allocation4 + $0x1a0] sm:$0xff] }
  0x71   : > { %2736 = vmatpush3.bf16.msra.mxu0 %v2796_v12  ;;  %v2482_v58 = vcombine.high %v689_v56, %v693_v57  ;;  %v2481_v59 = vcombine.low %v689_v56, %v693_v57  ;;  %v697_v60 = vld [vmem:[#allocation4 + $0x1c0] sm:$0xff]  ;;  %v718_v56 = vld [vmem:[#allocation4 + $0x268] sm:$0xff] }
  0x72   : > { %2737 = vmatprep.subr.bf16.mxu0 %v2998_v0  ;;  %607 = vmatpush1.bf16.msra.mxu1 %v2816_v21  ;;  %v701_v61 = vld [vmem:[#allocation4 + $0x1e0] sm:$0xff]  ;;  %v650_v21 = vld [vmem:[#allocation4 + $0x48] sm:$0xff] }
  0x73   : > { %608 = vmatprep.subr.bf16.mxu1 %v2817_v22  ;;  %v2490_v62 = vcombine.high %v697_v60, %v701_v61  ;;  %v2489_v63 = vcombine.low %v697_v60, %v701_v61  ;;  %v709_v1 = vld [vmem:[#allocation4 + $0x220] sm:$0xff]  ;;  %v654_v22 = vld [vmem:[#allocation4 + $0x68] sm:$0xff] }
  0x74   : > { %v713_v4 = vld [vmem:[#allocation4 + $0x240] sm:$0xff]  ;;  %v2443_v29 = vcombine.low %v650_v21, %v654_v22  ;;  %v726_v60 = vld [vmem:[#allocation4 + $0x2a8] sm:$0xff] }
  0x75   : > { %2738 = vmatpush3.bf16.msra.mxu0 %v2797_v16  ;;  %v717_v5 = vld [vmem:[#allocation4 + $0x260] sm:$0xff] }
  0x76   : > { %2739 = vmatprep.subr.bf16.mxu0 %v2998_v0  ;;  %609 = vmatpush1.bf16.msra.mxu1 %v2819_v24  ;;  %v705_v0 = vld [vmem:[#allocation4 + $0x200] sm:$0xff]  ;;  %v2506_v6 = vcombine.high %v713_v4, %v717_v5  ;;  %v2505_v7 = vcombine.low %v713_v4, %v717_v5 }
  0x77   : > { %610 = vmatprep.subr.bf16.mxu1 %v2820_v25  ;;  %v2498_v2 = vcombine.high %v705_v0, %v709_v1  ;;  %v2497_v3 = vcombine.low %v705_v0, %v709_v1  ;;  %v721_v8 = vld [vmem:[#allocation4 + $0x280] sm:$0xff]  ;;  %v734_v0 = vld [vmem:[#allocation4 + $0x2e8] sm:$0xff] }
  0x78   : > { %v725_v9 = vld [vmem:[#allocation4 + $0x2a0] sm:$0xff] }
  0x79   : > { %2740 = vmatpush3.bf16.msra.mxu0 %v2798_v19  ;;  %v2514_v10 = vcombine.high %v721_v8, %v725_v9  ;;  %v2513_v11 = vcombine.low %v721_v8, %v725_v9  ;;  %v729_v12 = vld [vmem:[#allocation4 + $0x2c0] sm:$0xff]  ;;  %v742_v8 = vld [vmem:[#allocation4 + $0x328] sm:$0xff] }
  0x7a   : > { %611 = vmatpush1.bf16.msra.mxu1 %v2822_v26  ;;  %1451 = vmatprep.subr.bf16.mxu0 %v2434_v32  ;;  %v733_v13 = vld [vmem:[#allocation4 + $0x2e0] sm:$0xff]  ;;  %v2444_v26 = vcombine.high %v650_v21, %v654_v22  ;;  %v666_v32 = vld [vmem:[#allocation4 + $0xc8] sm:$0xff] }
  0x7b   : > { %1492 = vmatprep.subr.bf16.mxu1 %v2436_v37  ;;  %v2522_v14 = vcombine.high %v729_v12, %v733_v13  ;;  %v2521_v15 = vcombine.low %v729_v12, %v733_v13  ;;  %v2408_v16 = vld [vmem:[%s3286_s2] ss:$0 sm:$0xff]  ;;  %v2460_v37 = vcombine.high %v666_v32, %v670_v34  ;;  %v2459_v40 = vcombine.low %v666_v32, %v670_v34  ;;  %v754_v22 = vld [vmem:[#allocation4 + $0x388] sm:$0xff] }
  0x7c   : > { %2742 = vmatmul.mubr.bf16.vlgmr.msra.gmra.mrb[0].mxu0 %v374_v23  ;;  %v737_v4 = vld [vmem:[#allocation4 + $0x300] sm:$0xff]  ;;  %v766_v34 = vld [vmem:[#allocation4 + $0x3e8] sm:$0xff] }
  0x7d   : > { %1452 = vmatpush1.bf16.msra.mxu0 %v2433_v31  ;;  %v2452_v31 = vcombine.high %v658_v27, %v662_v28  ;;  %v741_v5 = vld [vmem:[#allocation4 + $0x320] sm:$0xff] }
  0x7e   : > { %1453 = vmatprep.subr.bf16.mxu0 %v2442_v38  ;;  %v674_v38 = vld [vmem:[#allocation4 + $0x108] sm:$0xff]  ;;  %v2529_v9 = vcombine.low %v737_v4, %v741_v5  ;;  %v745_v12 = vld [vmem:[#allocation4 + $0x340] sm:$0xff] }
  0x7f   : > { %v749_v13 = vld [vmem:[#allocation4 + $0x360] sm:$0xff] }
  0x80   : > { %v757_v21 = vld [vmem:[#allocation4 + $0x3a0] sm:$0xff] }
  0x81   : > { %1454 = vmatpush1.bf16.msra.mxu0 %v2441_v39  ;;  %v678_v39 = vld [vmem:[#allocation4 + $0x128] sm:$0xff]  ;;  %v761_v28 = vld [vmem:[#allocation4 + $0x3c0] sm:$0xff] }
  0x82   : > { %1455 = vmatprep.subr.bf16.mxu0 %v2450_v42  ;;  %v2468_v41 = vcombine.high %v674_v38, %v678_v39  ;;  %v682_v42 = vld [vmem:[#allocation4 + $0x148] sm:$0xff]  ;;  %v2467_v30 = vcombine.low %v674_v38, %v678_v39  ;;  %v643_v39 = vld [vmem:[#allocation4 + $0x10] sm:$0xff] }
  0x85   : > { %1456 = vmatpush1.bf16.msra.mxu0 %v2449_v43  ;;  %v686_v43 = vld [vmem:[#allocation4 + $0x168] sm:$0xff] }
  0x86   : > { %1457 = vmatprep.subr.bf16.mxu0 %v2458_v46  ;;  %v2476_v33 = vcombine.high %v682_v42, %v686_v43  ;;  %v2475_v45 = vcombine.low %v682_v42, %v686_v43  ;;  %v648_v43 = vld [vmem:[#allocation4 + $0x38] sm:$0xff] }
  0x89   : > { %1458 = vmatpush1.bf16.msra.mxu0 %v2457_v47  ;;  %v698_v47 = vld [vmem:[#allocation4 + $0x1c8] sm:$0xff] }
  0x8a   : > { %1459 = vmatprep.subr.bf16.mxu0 %v2466_v50  ;;  %v2492_v50 = vcombine.high %v698_v47, %v702_v48  ;;  %v2491_v53 = vcombine.low %v698_v47, %v702_v48  ;;  %v504_v47 = vld [vmem:[%s3288_s4] sm:$0x3] }
  0x8d   : > { %1460 = vmatpush1.bf16.msra.mxu0 %v2465_v51  ;;  %v706_v51 = vld [vmem:[#allocation4 + $0x208] sm:$0xff] }
  0x8e   : > { %1461 = vmatprep.subr.bf16.mxu0 %v2474_v54  ;;  %v2500_v54 = vcombine.high %v706_v51, %v710_v52  ;;  %v2499_v57 = vcombine.low %v706_v51, %v710_v52 }
  0x91   : > { %1462 = vmatpush1.bf16.msra.mxu0 %v2473_v55  ;;  %v714_v55 = vld [vmem:[#allocation4 + $0x248] sm:$0xff] }
  0x92   : > { %1463 = vmatprep.subr.bf16.mxu0 %v2482_v58  ;;  %v2508_v58 = vcombine.high %v714_v55, %v718_v56  ;;  %v2507_v61 = vcombine.low %v714_v55, %v718_v56 }
  0x95   : > { %1464 = vmatpush1.bf16.msra.mxu0 %v2481_v59  ;;  %v722_v59 = vld [vmem:[#allocation4 + $0x288] sm:$0xff] }
  0x96   : > { %1465 = vmatprep.subr.bf16.mxu0 %v2490_v62  ;;  %v2516_v62 = vcombine.high %v722_v59, %v726_v60  ;;  %v2515_v1 = vcombine.low %v722_v59, %v726_v60  ;;  %v655_v60 = vld [vmem:[#allocation4 + $0x70] sm:$0xff] }
  0x99   : > { %1466 = vmatpush1.bf16.msra.mxu0 %v2489_v63  ;;  %v730_v63 = vld [vmem:[#allocation4 + $0x2c8] sm:$0xff] }
  0x9a   : > { %1467 = vmatprep.subr.bf16.mxu0 %v2498_v2  ;;  %v2524_v2 = vcombine.high %v730_v63, %v734_v0 }
  0x9d   : > { %1468 = vmatpush1.bf16.msra.mxu0 %v2497_v3  ;;  %v2523_v3 = vcombine.low %v730_v63, %v734_v0 }
  0x9e   : > { %1469 = vmatprep.subr.bf16.mxu0 %v2506_v6  ;;  %v738_v6 = vld [vmem:[#allocation4 + $0x308] sm:$0xff] }
  0xa1   : > { %1470 = vmatpush1.bf16.msra.mxu0 %v2505_v7  ;;  %v2530_v7 = vcombine.high %v737_v4, %v741_v5  ;;  %v663_v4 = vld [vmem:[#allocation4 + $0xb0] sm:$0xff]  ;;  %v660_v5 = vld [vmem:[#allocation4 + $0x98] sm:$0xff] }
  0xa2   : > { %1471 = vmatprep.subr.bf16.mxu0 %v2514_v10  ;;  %v2531_v10 = vcombine.low %v738_v6, %v742_v8 }
  0xa5   : > { %1472 = vmatpush1.bf16.msra.mxu0 %v2513_v11  ;;  %v2532_v11 = vcombine.high %v738_v6, %v742_v8  ;;  %v664_v6 = vld [vmem:[#allocation4 + $0xb8] sm:$0xff] }
  0xa6   : > { %1473 = vmatprep.subr.bf16.mxu0 %v2522_v14  ;;  %v746_v14 = vld [vmem:[#allocation4 + $0x348] sm:$0xff] }
  0xa9   : > { %1474 = vmatpush1.bf16.msra.mxu0 %v2521_v15  ;;  %v2538_v15 = vcombine.high %v745_v12, %v749_v13 }
  0xaa   : > { %1475 = vmatprep.subr.bf16.mxu0 %v2530_v7 }
  0xad   : > { %1476 = vmatpush1.bf16.msra.mxu0 %v2529_v9 }
  0xae   : > { %1477 = vmatprep.subr.bf16.mxu0 %v2538_v15 }
 0x14f   : > { %v480_v17 = vpop.f32.mrb[0].mxu0 }
 0x150   : > { %v481_v18 = vadd.f32 %v2408_v16, %v480_v17  ;;  %v2743_v19 = vpop.f32.mrb[1].mxu0  ;;  %v750_v16 = vld [vmem:[#allocation4 + $0x368] sm:$0xff]  ;;  %v2537_v17 = vcombine.low %v745_v12, %v749_v13  ;;  %v671_v12 = vld [vmem:[#allocation4 + $0xf0] sm:$0xff]  ;;  %v668_v13 = vld [vmem:[#allocation4 + $0xd8] sm:$0xff] }
 0x151   : > { %v483_v20 = vpop.f32.mrb[2].mxu0  ;;  %v2540_v19 = vcombine.high %v746_v14, %v750_v16 }
 0x152   : > { %v486_v23 = vmax.f32 %v481_v18, 0.0  ;;  %v2744_v24 = vpop.f32.mrb[3].mxu0  ;;  %v2539_v18 = vcombine.low %v746_v14, %v750_v16  ;;  %1478 = vmatpush1.bf16.msra.mxu0 %v2537_v17  ;;  %v753_v20 = vld [vmem:[#allocation4 + $0x380] sm:$0xff]  ;;  %v672_v14 = vld [vmem:[#allocation4 + $0xf8] sm:$0xff]  ;;  %v2455_v16 = vcombine.low %v660_v5, %v664_v6 }
 0x153   : > { %v758_v24 = vld [vmem:[#allocation4 + $0x3a8] sm:$0xff] }
 0x154   : > { %v487_v25 = vpack.c.bf16 %v486_v23, %v486_v23  ;;  %v2546_v23 = vcombine.high %v753_v20, %v757_v21  ;;  %v2548_v27 = vcombine.high %v754_v22, %v758_v24 }
 0x156   : > { %629 = vmatmul.mubr.bf16.vlgmr.msra.gmra.mrb[0].mxu1 %v487_v25  ;;  %v2545_v25 = vcombine.low %v753_v20, %v757_v21  ;;  %1479 = vmatprep.subr.bf16.mxu0 %v2546_v23  ;;  %v679_v20 = vld [vmem:[#allocation4 + $0x130] sm:$0xff]  ;;  %v676_v21 = vld [vmem:[#allocation4 + $0x118] sm:$0xff] }
 0x157   : > { %1493 = vmatpush1.bf16.msra.mxu1 %v2435_v36  ;;  %v690_v36 = vld [vmem:[#allocation4 + $0x188] sm:$0xff] }
 0x158   : > { %1494 = vmatprep.subr.bf16.mxu1 %v2444_v26  ;;  %v2484_v46 = vcombine.high %v690_v36, %v694_v44  ;;  %v2483_v49 = vcombine.low %v690_v36, %v694_v44  ;;  %v2547_v26 = vcombine.low %v754_v22, %v758_v24  ;;  %1480 = vmatpush1.bf16.msra.mxu0 %v2545_v25  ;;  %v506_v44 = vlaneseq  ;;  %v680_v22 = vld [vmem:[#allocation4 + $0x138] sm:$0xff] }
 0x159   : > { %v2463_v24 = vcombine.low %v668_v13, %v672_v14 }
 0x15b   : > { %1495 = vmatpush1.bf16.msra.mxu1 %v2443_v29  ;;  %v765_v29 = vld [vmem:[#allocation4 + $0x3e0] sm:$0xff] }
 0x15c   : > { %1496 = vmatprep.subr.bf16.mxu1 %v2452_v31  ;;  %v762_v31 = vld [vmem:[#allocation4 + $0x3c8] sm:$0xff]  ;;  %v2554_v32 = vcombine.high %v761_v28, %v765_v29 }
 0x15d   : > { %v2556_v38 = vcombine.high %v762_v31, %v766_v34 }
 0x15e   : > { %1481 = vmatprep.subr.bf16.mxu0 %v2554_v32 }
 0x15f   : > { %1497 = vmatpush1.bf16.msra.mxu1 %v2451_v35  ;;  %v2553_v35 = vcombine.low %v761_v28, %v765_v29  ;;  %v687_v28 = vld [vmem:[#allocation4 + $0x170] sm:$0xff]  ;;  %v684_v29 = vld [vmem:[#allocation4 + $0x158] sm:$0xff] }
 0x160   : > { %1498 = vmatprep.subr.bf16.mxu1 %v2460_v37  ;;  %v2555_v37 = vcombine.low %v762_v31, %v766_v34  ;;  %v688_v31 = vld [vmem:[#allocation4 + $0x178] sm:$0xff]  ;;  %v2471_v34 = vcombine.low %v676_v21, %v680_v22 }
 0x161   : > { %1482 = vmatpush1.bf16.msra.mxu0 %v2553_v35 }
 0x163   : > { %1499 = vmatpush1.bf16.msra.mxu1 %v2459_v40  ;;  %v647_v40 = vld [vmem:[#allocation4 + $0x30] sm:$0xff] }
 0x164   : > { %1500 = vmatprep.subr.bf16.mxu1 %v2468_v41  ;;  %v644_v41 = vld [vmem:[#allocation4 + $0x18] sm:$0xff]  ;;  %v2438_v42 = vcombine.high %v643_v39, %v647_v40 }
 0x165   : > { %v2440_v36 = vcombine.high %v644_v41, %v648_v43 }
 0x166   : > { %1533 = vmatprep.subr.bf16.mxu0 %v2438_v42 }
 0x167   : > { %1501 = vmatpush1.bf16.msra.mxu1 %v2467_v30  ;;  %v2437_v30 = vcombine.low %v643_v39, %v647_v40  ;;  %v695_v39 = vld [vmem:[#allocation4 + $0x1b0] sm:$0xff]  ;;  %v692_v40 = vld [vmem:[#allocation4 + $0x198] sm:$0xff] }
 0x168   : > { %1502 = vmatprep.subr.bf16.mxu1 %v2476_v33  ;;  %v2439_v33 = vcombine.low %v644_v41, %v648_v43  ;;  %v696_v41 = vld [vmem:[#allocation4 + $0x1b8] sm:$0xff]  ;;  %v2479_v43 = vcombine.low %v684_v29, %v688_v31 }
 0x16b   : > { %1503 = vmatpush1.bf16.msra.mxu1 %v2475_v45  ;;  %v3233_v45 = vshrl.u32 %v506_v44, 7  ;;  %v703_v44 = vld [vmem:[#allocation4 + $0x1f0] sm:$0xff] }
 0x16c   : > { %1504 = vmatprep.subr.bf16.mxu1 %v2484_v46 }
 0x16d   : > { %v508_v46 = vsub.s32 0, %v3233_v45  ;;  %v512_v48 = vsub.s32 1, %v3233_v45 }
 0x16f   : > { %1505 = vmatpush1.bf16.msra.mxu1 %v2483_v49  ;;  %v509_v49 = vrot.slane %v504_v47, %v508_v46 }
 0x170   : > { %1506 = vmatprep.subr.bf16.mxu1 %v2492_v50  ;;  %v513_v50 = vrot.slane %v504_v47, %v512_v48  ;;  %v700_v47 = vld [vmem:[#allocation4 + $0x1d8] sm:$0xff] }
 0x173   : > { %1507 = vmatpush1.bf16.msra.mxu1 %v2491_v53 }
 0x174   : > { %1508 = vmatprep.subr.bf16.mxu1 %v2500_v54 }
 0x177   : > { %1509 = vmatpush1.bf16.msra.mxu1 %v2499_v57 }
 0x178   : > { %1510 = vmatprep.subr.bf16.mxu1 %v2508_v58  ;;  %v651_v58 = vld [vmem:[#allocation4 + $0x50] sm:$0xff] }
 0x179   : > { %v2445_v7 = vcombine.low %v651_v58, %v655_v60 }
 0x17b   : > { %1511 = vmatpush1.bf16.msra.mxu1 %v2507_v61  ;;  %v652_v61 = vld [vmem:[#allocation4 + $0x58] sm:$0xff] }
 0x17c   : > { %1512 = vmatprep.subr.bf16.mxu1 %v2516_v62  ;;  %v656_v62 = vld [vmem:[#allocation4 + $0x78] sm:$0xff] }
 0x17d   : > { %v2447_v8 = vcombine.low %v652_v61, %v656_v62 }
 0x17f   : > { %1513 = vmatpush1.bf16.msra.mxu1 %v2515_v1  ;;  %v659_v1 = vld [vmem:[#allocation4 + $0x90] sm:$0xff] }
 0x180   : > { %1514 = vmatprep.subr.bf16.mxu1 %v2524_v2  ;;  %v2446_v2 = vcombine.high %v651_v58, %v655_v60  ;;  %v2454_v9 = vcombine.high %v659_v1, %v663_v4  ;;  %v2453_v15 = vcombine.low %v659_v1, %v663_v4  ;;  %v716_v1 = vld [vmem:[#allocation4 + $0x258] sm:$0xff] }
 0x183   : > { %1515 = vmatpush1.bf16.msra.mxu1 %v2523_v3  ;;  %v2448_v3 = vcombine.high %v652_v61, %v656_v62  ;;  %v715_v62 = vld [vmem:[#allocation4 + $0x250] sm:$0xff] }
 0x184   : > { %1516 = vmatprep.subr.bf16.mxu1 %v2532_v11  ;;  %v667_v11 = vld [vmem:[#allocation4 + $0xd0] sm:$0xff] }
 0x185   : > { %v2462_v17 = vcombine.high %v667_v11, %v671_v12  ;;  %v2461_v23 = vcombine.low %v667_v11, %v671_v12 }
 0x187   : > { %1517 = vmatpush1.bf16.msra.mxu1 %v2531_v10  ;;  %v2456_v10 = vcombine.high %v660_v5, %v664_v6 }
 0x188   : > { %1518 = vmatprep.subr.bf16.mxu1 %v2540_v19  ;;  %v675_v19 = vld [vmem:[#allocation4 + $0x110] sm:$0xff] }
 0x189   : > { %v2470_v25 = vcombine.high %v675_v19, %v679_v20  ;;  %v2469_v32 = vcombine.low %v675_v19, %v679_v20 }
 0x18b   : > { %1519 = vmatpush1.bf16.msra.mxu1 %v2539_v18  ;;  %v2464_v18 = vcombine.high %v668_v13, %v672_v14 }
 0x18c   : > { %1520 = vmatprep.subr.bf16.mxu1 %v2548_v27  ;;  %v683_v27 = vld [vmem:[#allocation4 + $0x150] sm:$0xff] }
 0x18d   : > { %v2478_v35 = vcombine.high %v683_v27, %v687_v28  ;;  %v2477_v42 = vcombine.low %v683_v27, %v687_v28 }
 0x18f   : > { %1521 = vmatpush1.bf16.msra.mxu1 %v2547_v26  ;;  %v2472_v26 = vcombine.high %v676_v21, %v680_v22 }
 0x190   : > { %1522 = vmatprep.subr.bf16.mxu1 %v2556_v38  ;;  %v691_v38 = vld [vmem:[#allocation4 + $0x190] sm:$0xff] }
 0x193   : > { %1523 = vmatpush1.bf16.msra.mxu1 %v2555_v37  ;;  %v2480_v37 = vcombine.high %v684_v29, %v688_v31 }
 0x194   : > { %1574 = vmatprep.subr.bf16.mxu1 %v2440_v36  ;;  %v699_v36 = vld [vmem:[#allocation4 + $0x1d0] sm:$0xff] }
 0x195   : > { %v2493_v58 = vcombine.low %v699_v36, %v703_v44 }
 0x229   : > { %v630_v51 = vpop.f32.mrb[0].mxu1 }
 0x22a   : > { %v631_v52 = vadd.f32 %v630_v51, %v509_v49  ;;  %v632_v53 = vpop.f32.mrb[1].mxu1  ;;  %v704_v49 = vld [vmem:[#allocation4 + $0x1f8] sm:$0xff]  ;;  %v2487_v51 = vcombine.low %v692_v40, %v696_v41 }
 0x22b   : > { %v633_v54 = vadd.f32 %v632_v53, %v513_v50  ;;  %v634_v55 = vpop.f32.mrb[2].mxu1  ;;  %v2485_v50 = vcombine.low %v691_v38, %v695_v39  ;;  %v2496_v53 = vcombine.high %v700_v47, %v704_v49 }
 0x22c   : > { %2887 = vtanh.f32 %v631_v52  ;;  %v635_v56 = vpop.f32.mrb[3].mxu1  ;;  %v2494_v52 = vcombine.high %v699_v36, %v703_v44  ;;  %v711_v55 = vld [vmem:[#allocation4 + $0x230] sm:$0xff] }
 0x22d   : > { %2889 = vtanh.f32 %v633_v54  ;;  %v707_v54 = vld [vmem:[#allocation4 + $0x210] sm:$0xff]  ;;  %v708_v56 = vld [vmem:[#allocation4 + $0x218] sm:$0xff] }
 0x22e   : > { %v2502_v60 = vcombine.high %v707_v54, %v711_v55 }
 0x236   : > { %v2888_v57 = vpop.eup %2887 }
 0x237   : > { %v2890_v59 = vpop.eup %2889  ;;  %v3244_v0 = vpack.c.bf16 %v2888_v57, %v2888_v57  ;;  %v712_v57 = vld [vmem:[#allocation4 + $0x238] sm:$0xff] }
 0x238   : > { %v640_v63 = vpack.c.bf16 %v2890_v59, %v2890_v59  ;;  %v2495_v59 = vcombine.low %v700_v47, %v704_v49  ;;  %v2504_v61 = vcombine.high %v708_v56, %v712_v57  ;;  %v2503_v4 = vcombine.low %v708_v56, %v712_v57 }
 0x23a   : > { %1483 = vmatprep.mubr.bf16.mxu0 %v640_v63  ;;  %1524 = vmatprep.mubr.bf16.mxu1 %v640_v63 }
 0x23b   : > { %1484 = vmatmul.mubr.bf16.vlgmr.msra.gmra.mrb[4].mxu0 %v3244_v0  ;;  %1525 = vmatmul.mubr.bf16.vlgmr.msra.gmra.mrb[4].mxu1 %v3244_v0 }
 0x23c   : > { %1534 = vmatpush1.bf16.msra.mxu0 %v2437_v30  ;;  %1575 = vmatpush1.bf16.msra.mxu1 %v2439_v33  ;;  %v2486_v30 = vcombine.high %v691_v38, %v695_v39  ;;  %v2488_v33 = vcombine.high %v692_v40, %v696_v41 }
 0x23d   : > { %1565 = vmatprep.mubr.bf16.mxu0 %v640_v63  ;;  %1606 = vmatprep.mubr.bf16.mxu1 %v640_v63  ;;  %v719_v63 = vld [vmem:[#allocation4 + $0x270] sm:$0xff] }
 0x23e   : > { %1535 = vmatprep.subr.bf16.mxu0 %v2446_v2  ;;  %1576 = vmatprep.subr.bf16.mxu1 %v2448_v3  ;;  %v720_v2 = vld [vmem:[#allocation4 + $0x278] sm:$0xff]  ;;  %v2501_v3 = vcombine.low %v707_v54, %v711_v55  ;;  %v2510_v5 = vcombine.high %v715_v62, %v719_v63  ;;  %v2509_v11 = vcombine.low %v715_v62, %v719_v63  ;;  %v2825_v62 = vld [vmem:[#allocation6] sm:$0xff]  }
 0x23f   : > { %v2512_v6 = vcombine.high %v716_v1, %v720_v2  ;;  %v2511_v12 = vcombine.low %v716_v1, %v720_v2  ;;  %v2826_v63 = vld [vmem:[#allocation6 + $0x80] sm:$0xff]   ;;  %v2827_v1 = vld [vmem:[#allocation6 + $0x48] sm:$0xff]  }
 0x240   : > { %1536 = vmatpush1.bf16.msra.mxu0 %v2445_v7  ;;  %1577 = vmatpush1.bf16.msra.mxu1 %v2447_v8  ;;  %v723_v7 = vld [vmem:[#allocation4 + $0x290] sm:$0xff]  ;;  %v2828_v2 = vld [vmem:[#allocation6 + $0xc8] sm:$0xff]  }
 0x241   : > { %1537 = vmatprep.subr.bf16.mxu0 %v2454_v9  ;;  %1578 = vmatprep.subr.bf16.mxu1 %v2456_v10  ;;  %v727_v8 = vld [vmem:[#allocation4 + $0x2b0] sm:$0xff]  ;;  %v724_v9 = vld [vmem:[#allocation4 + $0x298] sm:$0xff] }
 0x242   : > { %v728_v10 = vld [vmem:[#allocation4 + $0x2b8] sm:$0xff]  ;;  %v2518_v13 = vcombine.high %v723_v7, %v727_v8  ;;  %v2517_v19 = vcombine.low %v723_v7, %v727_v8  ;;  %v2833_v7 = vld [vmem:[#allocation6 + $0x10] sm:$0xff]  }
 0x243   : > { %v2520_v14 = vcombine.high %v724_v9, %v728_v10  ;;  %v2519_v20 = vcombine.low %v724_v9, %v728_v10  ;;  %v2834_v8 = vld [vmem:[#allocation6 + $0x90] sm:$0xff]   ;;  %v2835_v9 = vld [vmem:[#allocation6 + $0x58] sm:$0xff]  }
 0x244   : > { %1538 = vmatpush1.bf16.msra.mxu0 %v2453_v15  ;;  %1579 = vmatpush1.bf16.msra.mxu1 %v2455_v16  ;;  %v731_v15 = vld [vmem:[#allocation4 + $0x2d0] sm:$0xff]  ;;  %v2836_v10 = vld [vmem:[#allocation6 + $0xd8] sm:$0xff]  }
 0x245   : > { %1539 = vmatprep.subr.bf16.mxu0 %v2462_v17  ;;  %1580 = vmatprep.subr.bf16.mxu1 %v2464_v18  ;;  %v735_v16 = vld [vmem:[#allocation4 + $0x2f0] sm:$0xff]  ;;  %v732_v17 = vld [vmem:[#allocation4 + $0x2d8] sm:$0xff] }
 0x246   : > { %v736_v18 = vld [vmem:[#allocation4 + $0x2f8] sm:$0xff]  ;;  %v2526_v21 = vcombine.high %v731_v15, %v735_v16  ;;  %v2525_v27 = vcombine.low %v731_v15, %v735_v16  ;;  %v2842_v15 = vld [vmem:[#allocation6 + $0xa0] sm:$0xff]   ;;  %v2843_v16 = vld [vmem:[#allocation6 + $0x68] sm:$0xff]  }
 0x247   : > { %v2528_v22 = vcombine.high %v732_v17, %v736_v18  ;;  %v2527_v28 = vcombine.low %v732_v17, %v736_v18  ;;  %v2844_v17 = vld [vmem:[#allocation6 + $0xe8] sm:$0xff]  }
 0x248   : > { %1540 = vmatpush1.bf16.msra.mxu0 %v2461_v23  ;;  %1581 = vmatpush1.bf16.msra.mxu1 %v2463_v24  ;;  %v739_v23 = vld [vmem:[#allocation4 + $0x310] sm:$0xff]  ;;  %v2845_v18 = vld [vmem:[#allocation6 + $0x28] sm:$0xff]  }
 0x249   : > { %1541 = vmatprep.subr.bf16.mxu0 %v2470_v25  ;;  %1582 = vmatprep.subr.bf16.mxu1 %v2472_v26  ;;  %v743_v24 = vld [vmem:[#allocation4 + $0x330] sm:$0xff]  ;;  %v740_v25 = vld [vmem:[#allocation4 + $0x318] sm:$0xff] }
 0x24a   : > { %v744_v26 = vld [vmem:[#allocation4 + $0x338] sm:$0xff]  ;;  %v2534_v29 = vcombine.high %v739_v23, %v743_v24  ;;  %v2533_v38 = vcombine.low %v739_v23, %v743_v24  ;;  %v2850_v23 = vld [vmem:[#allocation6 + $0xb0] sm:$0xff]  }
 0x24b   : > { %v2536_v31 = vcombine.high %v740_v25, %v744_v26  ;;  %v2535_v39 = vcombine.low %v740_v25, %v744_v26  ;;  %v2851_v24 = vld [vmem:[#allocation6 + $0x78] sm:$0xff]  }
 0x24c   : > { %1542 = vmatpush1.bf16.msra.mxu0 %v2469_v32  ;;  %1583 = vmatpush1.bf16.msra.mxu1 %v2471_v34  ;;  %v747_v32 = vld [vmem:[#allocation4 + $0x350] sm:$0xff]  ;;  %v2852_v25 = vld [vmem:[#allocation6 + $0xf8] sm:$0xff]  }
 0x24d   : > { %1543 = vmatprep.subr.bf16.mxu0 %v2478_v35  ;;  %1584 = vmatprep.subr.bf16.mxu1 %v2480_v37  ;;  %v751_v34 = vld [vmem:[#allocation4 + $0x370] sm:$0xff]  ;;  %v748_v35 = vld [vmem:[#allocation4 + $0x358] sm:$0xff] }
 0x24e   : > { %v752_v37 = vld [vmem:[#allocation4 + $0x378] sm:$0xff]  ;;  %v2542_v40 = vcombine.high %v747_v32, %v751_v34  ;;  %v2541_v36 = vcombine.low %v747_v32, %v751_v34  ;;  %v3254_v32 = vld [vmem:[%s3290_s6] sm:$0xff]  ;;  %v785_v34 = vsub.s32 3, %v3233_v45 }
 0x24f   : > { %v2544_v41 = vcombine.high %v748_v35, %v752_v37  ;;  %v2543_v44 = vcombine.low %v748_v35, %v752_v37  ;;  %v2853_v26 = vld [vmem:[#allocation6 + $0x38] sm:$0xff]   ;;  %v774_v35 = vrot.slane %v3254_v32, %v508_v46 }
 0x250   : > { %1544 = vmatpush1.bf16.msra.mxu0 %v2477_v42  ;;  %1585 = vmatpush1.bf16.msra.mxu1 %v2479_v43  ;;  %v755_v42 = vld [vmem:[#allocation4 + $0x390] sm:$0xff] }
 0x251   : > { %1545 = vmatprep.subr.bf16.mxu0 %v2486_v30  ;;  %1586 = vmatprep.subr.bf16.mxu1 %v2488_v33  ;;  %v759_v43 = vld [vmem:[#allocation4 + $0x3b0] sm:$0xff]  ;;  %v756_v30 = vld [vmem:[#allocation4 + $0x398] sm:$0xff] }
 0x252   : > { %v760_v33 = vld [vmem:[#allocation4 + $0x3b8] sm:$0xff]  ;;  %v2550_v47 = vcombine.high %v755_v42, %v759_v43  ;;  %v2549_v54 = vcombine.low %v755_v42, %v759_v43 }
 0x253   : > { %v2552_v49 = vcombine.high %v756_v30, %v760_v33  ;;  %v2551_v55 = vcombine.low %v756_v30, %v760_v33 }
 0x254   : > { %1546 = vmatpush1.bf16.msra.mxu0 %v2485_v50  ;;  %1587 = vmatpush1.bf16.msra.mxu1 %v2487_v51  ;;  %v763_v50 = vld [vmem:[#allocation4 + $0x3d0] sm:$0xff] }
 0x255   : > { %1547 = vmatprep.subr.bf16.mxu0 %v2494_v52  ;;  %1588 = vmatprep.subr.bf16.mxu1 %v2496_v53  ;;  %v767_v51 = vld [vmem:[#allocation4 + $0x3f0] sm:$0xff]  ;;  %v764_v52 = vld [vmem:[#allocation4 + $0x3d8] sm:$0xff] }
 0x256   : > { %v768_v53 = vld [vmem:[#allocation4 + $0x3f8] sm:$0xff]  ;;  %v2558_v56 = vcombine.high %v763_v50, %v767_v51 }
 0x257   : > { %v2560_v57 = vcombine.high %v764_v52, %v768_v53 }
 0x258   : > { %1548 = vmatpush1.bf16.msra.mxu0 %v2493_v58  ;;  %1589 = vmatpush1.bf16.msra.mxu1 %v2495_v59  ;;  %v2557_v58 = vcombine.low %v763_v50, %v767_v51  ;;  %v2559_v59 = vcombine.low %v764_v52, %v768_v53 }
 0x259   : > { %1549 = vmatprep.subr.bf16.mxu0 %v2502_v60  ;;  %1590 = vmatprep.subr.bf16.mxu1 %v2504_v61  ;;  %v2823_v60 = vld [vmem:[#allocation6 + $0x40] sm:$0xff]  }
 0x25a   : > { %v2824_v61 = vld [vmem:[#allocation6 + $0xc0] sm:$0xff]  }
 0x25c   : > { %1550 = vmatpush1.bf16.msra.mxu0 %v2501_v3  ;;  %1591 = vmatpush1.bf16.msra.mxu1 %v2503_v4  ;;  %v2829_v3 = vld [vmem:[#allocation6 + $0x8] sm:$0xff]  }
 0x25d   : > { %1551 = vmatprep.subr.bf16.mxu0 %v2510_v5  ;;  %1592 = vmatprep.subr.bf16.mxu1 %v2512_v6  ;;  %v2830_v4 = vld [vmem:[#allocation6 + $0x88] sm:$0xff]   ;;  %v2831_v5 = vld [vmem:[#allocation6 + $0x50] sm:$0xff]  }
 0x25e   : > { %v2832_v6 = vld [vmem:[#allocation6 + $0xd0] sm:$0xff]  }
 0x260   : > { %1552 = vmatpush1.bf16.msra.mxu0 %v2509_v11  ;;  %1593 = vmatpush1.bf16.msra.mxu1 %v2511_v12  ;;  %v2837_v11 = vld [vmem:[#allocation6 + $0x18] sm:$0xff]   ;;  %v2839_v12 = vld [vmem:[#allocation6 + $0x60] sm:$0xff]  }
 0x261   : > { %1553 = vmatprep.subr.bf16.mxu0 %v2518_v13  ;;  %1594 = vmatprep.subr.bf16.mxu1 %v2520_v14  ;;  %v2840_v13 = vld [vmem:[#allocation6 + $0xe0] sm:$0xff]  }
 0x262   : > { %v2841_v14 = vld [vmem:[#allocation6 + $0x20] sm:$0xff]  }
 0x264   : > { %1554 = vmatpush1.bf16.msra.mxu0 %v2517_v19  ;;  %1595 = vmatpush1.bf16.msra.mxu1 %v2519_v20  ;;  %v2846_v19 = vld [vmem:[#allocation6 + $0xa8] sm:$0xff]   ;;  %v2847_v20 = vld [vmem:[#allocation6 + $0x70] sm:$0xff]  }
 0x265   : > { %1555 = vmatprep.subr.bf16.mxu0 %v2526_v21  ;;  %1596 = vmatprep.subr.bf16.mxu1 %v2528_v22  ;;  %v2848_v21 = vld [vmem:[#allocation6 + $0xf0] sm:$0xff]  }
 0x266   : > { %v2849_v22 = vld [vmem:[#allocation6 + $0x30] sm:$0xff]  }
 0x268   : > { %1556 = vmatpush1.bf16.msra.mxu0 %v2525_v27  ;;  %1597 = vmatpush1.bf16.msra.mxu1 %v2527_v28  ;;  %v2854_v27 = vld [vmem:[#allocation6 + $0xb8] sm:$0xff]   ;;  %v2855_v28 = vld [vmem:[#allocation6 + $0x140] sm:$0xff]  }
 0x269   : > { %1557 = vmatprep.subr.bf16.mxu0 %v2534_v29  ;;  %1598 = vmatprep.subr.bf16.mxu1 %v2536_v31  ;;  %v2856_v29 = vld [vmem:[#allocation6 + $0x1c0] sm:$0xff]   ;;  %v781_v31 = vsub.s32 2, %v3233_v45 }
 0x26b   : > { %v782_v37 = vrot.slane %v3254_v32, %v781_v31 }
 0x26c   : > { %1558 = vmatpush1.bf16.msra.mxu0 %v2533_v38  ;;  %1599 = vmatpush1.bf16.msra.mxu1 %v2535_v39  ;;  %v778_v38 = vrot.slane %v3254_v32, %v512_v48  ;;  %v786_v39 = vrot.slane %v3254_v32, %v785_v34 }
 0x26d   : > { %1559 = vmatprep.subr.bf16.mxu0 %v2542_v40  ;;  %1600 = vmatprep.subr.bf16.mxu1 %v2544_v41 }
 0x270   : > { %1560 = vmatpush1.bf16.msra.mxu0 %v2541_v36  ;;  %1601 = vmatpush1.bf16.msra.mxu1 %v2543_v44 }
 0x271   : > { %1561 = vmatprep.subr.bf16.mxu0 %v2550_v47  ;;  %1602 = vmatprep.subr.bf16.mxu1 %v2552_v49 }
 0x274   : > { %1562 = vmatpush1.bf16.msra.mxu0 %v2549_v54  ;;  %1603 = vmatpush1.bf16.msra.mxu1 %v2551_v55 }
 0x275   : > { %1563 = vmatprep.subr.bf16.mxu0 %v2558_v56  ;;  %1604 = vmatprep.subr.bf16.mxu1 %v2560_v57  ;;  %v2857_v56 = vld [vmem:[#allocation6 + $0x100] sm:$0xff]  }
 0x276   : > { %v2858_v57 = vld [vmem:[#allocation6 + $0x180] sm:$0xff]  }
 0x278   : > { %1564 = vmatpush1.bf16.msra.mxu0 %v2557_v58  ;;  %1605 = vmatpush1.bf16.msra.mxu1 %v2559_v59 }
 0x279   : > { %2637 = vmatprep.subr.bf16.mxu0 %v2823_v60  ;;  %2659 = vmatprep.subr.bf16.mxu1 %v2824_v61  ;;  %v2859_v60 = vld [vmem:[#allocation6 + $0x148] sm:$0xff]  }
 0x27a   : > { %v2860_v61 = vld [vmem:[#allocation6 + $0x1c8] sm:$0xff]  }
 0x27b   : > { %1566 = vmatmul.mubr.bf16.vlgmr.msra.gmra.mrb[8].mxu0 %v3244_v0  ;;  %1607 = vmatmul.mubr.bf16.vlgmr.msra.gmra.mrb[8].mxu1 %v3244_v0  ;;  %v2838_v0 = vld [vmem:[#allocation6 + $0x98] sm:$0xff]  }
 0x27c   : > { %2638 = vmatpush3.bf16.msra.mxu0 %v2825_v62  ;;  %2660 = vmatpush3.bf16.msra.mxu1 %v2826_v63  ;;  %v2861_v62 = vld [vmem:[#allocation6 + $0x108] sm:$0xff]  }
 0x27d   : > { %2639 = vmatprep.subr.bf16.mxu0 %v2827_v1  ;;  %2661 = vmatprep.subr.bf16.mxu1 %v2828_v2  ;;  %v2862_v63 = vld [vmem:[#allocation6 + $0x188] sm:$0xff]   ;;  %v2863_v1 = vld [vmem:[#allocation6 + $0x150] sm:$0xff]  }
 0x27e   : > { %v2864_v2 = vld [vmem:[#allocation6 + $0x1d0] sm:$0xff]  }
 0x280   : > { %2640 = vmatpush3.bf16.msra.mxu0 %v2829_v3  ;;  %2662 = vmatpush3.bf16.msra.mxu1 %v2830_v4  ;;  %v2865_v3 = vld [vmem:[#allocation6 + $0x110] sm:$0xff]  }
 0x281   : > { %2641 = vmatprep.subr.bf16.mxu0 %v2831_v5  ;;  %2663 = vmatprep.subr.bf16.mxu1 %v2832_v6  ;;  %v2866_v4 = vld [vmem:[#allocation6 + $0x190] sm:$0xff]   ;;  %v2867_v5 = vld [vmem:[#allocation6 + $0x158] sm:$0xff]  }
 0x282   : > { %v2868_v6 = vld [vmem:[#allocation6 + $0x1d8] sm:$0xff]  }
 0x284   : > { %2642 = vmatpush3.bf16.msra.mxu0 %v2833_v7  ;;  %2664 = vmatpush3.bf16.msra.mxu1 %v2834_v8  ;;  %v2869_v7 = vld [vmem:[#allocation6 + $0x118] sm:$0xff]  }
 0x285   : > { %2643 = vmatprep.subr.bf16.mxu0 %v2835_v9  ;;  %2665 = vmatprep.subr.bf16.mxu1 %v2836_v10  ;;  %v2870_v8 = vld [vmem:[#allocation6 + $0x198] sm:$0xff]   ;;  %v2871_v9 = vld [vmem:[#allocation6 + $0x160] sm:$0xff]  }
 0x286   : > { %v2872_v10 = vld [vmem:[#allocation6 + $0x1e0] sm:$0xff]  }
 0x288   : > { %2644 = vmatpush3.bf16.msra.mxu0 %v2837_v11  ;;  %2666 = vmatpush3.bf16.msra.mxu1 %v2838_v0  ;;  %v2873_v11 = vld [vmem:[#allocation6 + $0x120] sm:$0xff]  }
 0x289   : > { %2645 = vmatprep.subr.bf16.mxu0 %v2839_v12  ;;  %2667 = vmatprep.subr.bf16.mxu1 %v2840_v13  ;;  %v2874_v0 = vld [vmem:[#allocation6 + $0x1a0] sm:$0xff]   ;;  %v2875_v12 = vld [vmem:[#allocation6 + $0x168] sm:$0xff]  }
 0x28a   : > { %v2876_v13 = vld [vmem:[#allocation6 + $0x1e8] sm:$0xff]  }
 0x28c   : > { %2646 = vmatpush3.bf16.msra.mxu0 %v2841_v14  ;;  %2668 = vmatpush3.bf16.msra.mxu1 %v2842_v15  ;;  %v2877_v14 = vld [vmem:[#allocation6 + $0x128] sm:$0xff]  }
 0x28d   : > { %2647 = vmatprep.subr.bf16.mxu0 %v2843_v16  ;;  %2669 = vmatprep.subr.bf16.mxu1 %v2844_v17  ;;  %v2878_v15 = vld [vmem:[#allocation6 + $0x1a8] sm:$0xff]   ;;  %v2879_v16 = vld [vmem:[#allocation6 + $0x170] sm:$0xff]  }
 0x28e   : > { %v2880_v17 = vld [vmem:[#allocation6 + $0x1f0] sm:$0xff]  }
 0x290   : > { %2648 = vmatpush3.bf16.msra.mxu0 %v2845_v18  ;;  %2670 = vmatpush3.bf16.msra.mxu1 %v2846_v19  ;;  %v2881_v18 = vld [vmem:[#allocation6 + $0x130] sm:$0xff]  }
 0x291   : > { %2649 = vmatprep.subr.bf16.mxu0 %v2847_v20  ;;  %2671 = vmatprep.subr.bf16.mxu1 %v2848_v21  ;;  %v2882_v19 = vld [vmem:[#allocation6 + $0x1b0] sm:$0xff]   ;;  %v2883_v20 = vld [vmem:[#allocation6 + $0x178] sm:$0xff]  }
 0x292   : > { %v2884_v21 = vld [vmem:[#allocation6 + $0x1f8] sm:$0xff]  }
 0x294   : > { %2650 = vmatpush3.bf16.msra.mxu0 %v2849_v22  ;;  %2672 = vmatpush3.bf16.msra.mxu1 %v2850_v23  ;;  %v2885_v22 = vld [vmem:[#allocation6 + $0x138] sm:$0xff]  }
 0x295   : > { %2651 = vmatprep.subr.bf16.mxu0 %v2851_v24  ;;  %2673 = vmatprep.subr.bf16.mxu1 %v2852_v25  ;;  %v2886_v23 = vld [vmem:[#allocation6 + $0x1b8] sm:$0xff]   ;;  %v789_v24 = vsub.s32 4, %v3233_v45  ;;  %v797_v25 = vsub.s32 6, %v3233_v45 }
 0x298   : > { %2652 = vmatpush3.bf16.msra.mxu0 %v2853_v26  ;;  %2674 = vmatpush3.bf16.msra.mxu1 %v2854_v27  ;;  %v793_v26 = vsub.s32 5, %v3233_v45  ;;  %v801_v27 = vsub.s32 7, %v3233_v45 }
 0x299   : > { %2681 = vmatprep.subr.bf16.mxu0 %v2855_v28  ;;  %2703 = vmatprep.subr.bf16.mxu1 %v2856_v29  ;;  %v790_v28 = vrot.slane %v3254_v32, %v789_v24  ;;  %v798_v29 = vrot.slane %v3254_v32, %v797_v25 }
 0x29a   : > { %v794_v31 = vrot.slane %v3254_v32, %v793_v26  ;;  %v802_v34 = vrot.slane %v3254_v32, %v801_v27 }
 0x30e   : > { %v1485_v40 = vpop.f32.mrb[4].mxu0  ;;  %v1526_v41 = vpop.f32.mrb[4].mxu1 }
 0x30f   : > { %v1486_v42 = vadd.f32 %v1485_v40, %v774_v35  ;;  %v1527_v43 = vadd.f32 %v1526_v41, %v782_v37  ;;  %v1487_v30 = vpop.f32.mrb[5].mxu0  ;;  %v1528_v33 = vpop.f32.mrb[5].mxu1 }
 0x310   : > { %v1488_v36 = vadd.f32 %v1487_v30, %v778_v38  ;;  %v1529_v44 = vadd.f32 %v1528_v33, %v786_v39  ;;  %v1489_v47 = vpop.f32.mrb[6].mxu0  ;;  %v1530_v49 = vpop.f32.mrb[6].mxu1 }
 0x311   : > { %v1615_v50 = vmax.f32 %v1486_v42, 0.0  ;;  %v1617_v46 = vmax.f32 %v1527_v43, 0.0  ;;  %v1490_v51 = vpop.f32.mrb[7].mxu0  ;;  %v1531_v52 = vpop.f32.mrb[7].mxu1 }
 0x312   : > { %v1616_v53 = vmax.f32 %v1488_v36, 0.0  ;;  %v1618_v54 = vmax.f32 %v1529_v44, 0.0 }
 0x313   : > { %v1623_v58 = vpack.c.bf16 %v1615_v50, %v1615_v50  ;;  %v1625_v59 = vpack.c.bf16 %v1617_v46, %v1617_v46 }
 0x314   : > { %v1624_v55 = vpack.c.bf16 %v1616_v53, %v1616_v53  ;;  %v1626_v48 = vpack.c.bf16 %v1618_v54, %v1618_v54 }
 0x316   : > { %2182 = vmatprep.mubr.bf16.mxu0 %v1624_v55  ;;  %2222 = vmatprep.mubr.bf16.mxu1 %v1626_v48  ;;  %v2561_v55 = vld [vmem:[%s3292_s8] ss:$0 sm:$0xff] }
 0x317   : > { %2183 = vmatmul.mubr.bf16.vlgmr.msra.gmra.mrb[12].mxu0 %v1623_v58  ;;  %2223 = vmatmul.mubr.bf16.vlgmr.msra.gmra.mrb[12].mxu1 %v1625_v59 }
 0x318   : > { %2682 = vmatpush3.bf16.msra.mxu0 %v2857_v56  ;;  %2704 = vmatpush3.bf16.msra.mxu1 %v2858_v57 }
 0x319   : > { %2683 = vmatprep.subr.bf16.mxu0 %v2859_v60  ;;  %2705 = vmatprep.subr.bf16.mxu1 %v2860_v61 }
 0x31c   : > { %2684 = vmatpush3.bf16.msra.mxu0 %v2861_v62  ;;  %2706 = vmatpush3.bf16.msra.mxu1 %v2862_v63 }
 0x31d   : > { %2685 = vmatprep.subr.bf16.mxu0 %v2863_v1  ;;  %2707 = vmatprep.subr.bf16.mxu1 %v2864_v2 }
 0x320   : > { %2686 = vmatpush3.bf16.msra.mxu0 %v2865_v3  ;;  %2708 = vmatpush3.bf16.msra.mxu1 %v2866_v4 }
 0x321   : > { %2687 = vmatprep.subr.bf16.mxu0 %v2867_v5  ;;  %2709 = vmatprep.subr.bf16.mxu1 %v2868_v6 }
 0x324   : > { %2688 = vmatpush3.bf16.msra.mxu0 %v2869_v7  ;;  %2710 = vmatpush3.bf16.msra.mxu1 %v2870_v8 }
 0x325   : > { %2689 = vmatprep.subr.bf16.mxu0 %v2871_v9  ;;  %2711 = vmatprep.subr.bf16.mxu1 %v2872_v10 }
 0x328   : > { %2690 = vmatpush3.bf16.msra.mxu0 %v2873_v11  ;;  %2712 = vmatpush3.bf16.msra.mxu1 %v2874_v0 }
 0x329   : > { %2691 = vmatprep.subr.bf16.mxu0 %v2875_v12  ;;  %2713 = vmatprep.subr.bf16.mxu1 %v2876_v13 }
 0x32c   : > { %2692 = vmatpush3.bf16.msra.mxu0 %v2877_v14  ;;  %2714 = vmatpush3.bf16.msra.mxu1 %v2878_v15 }
 0x32d   : > { %2693 = vmatprep.subr.bf16.mxu0 %v2879_v16  ;;  %2715 = vmatprep.subr.bf16.mxu1 %v2880_v17 }
 0x330   : > { %2694 = vmatpush3.bf16.msra.mxu0 %v2881_v18  ;;  %2716 = vmatpush3.bf16.msra.mxu1 %v2882_v19 }
 0x331   : > { %2695 = vmatprep.subr.bf16.mxu0 %v2883_v20  ;;  %2717 = vmatprep.subr.bf16.mxu1 %v2884_v21 }
 0x334   : > { %2696 = vmatpush3.bf16.msra.mxu0 %v2885_v22  ;;  %2718 = vmatpush3.bf16.msra.mxu1 %v2886_v23 }
 0x34e   : > { %v1567_v35 = vpop.f32.mrb[8].mxu0  ;;  %v1608_v37 = vpop.f32.mrb[8].mxu1 }
 0x34f   : > { %v1568_v38 = vadd.f32 %v1567_v35, %v790_v28  ;;  %v1609_v39 = vadd.f32 %v1608_v37, %v798_v29  ;;  %v1569_v40 = vpop.f32.mrb[9].mxu0  ;;  %v1610_v41 = vpop.f32.mrb[9].mxu1 }
 0x350   : > { %v1570_v42 = vadd.f32 %v1569_v40, %v794_v31  ;;  %v1611_v43 = vadd.f32 %v1610_v41, %v802_v34  ;;  %v1571_v30 = vpop.f32.mrb[10].mxu0  ;;  %v1612_v33 = vpop.f32.mrb[10].mxu1 }
 0x351   : > { %v1619_v36 = vmax.f32 %v1568_v38, 0.0  ;;  %v1621_v45 = vmax.f32 %v1609_v39, 0.0  ;;  %v1572_v44 = vpop.f32.mrb[11].mxu0  ;;  %v1613_v47 = vpop.f32.mrb[11].mxu1 }
 0x352   : > { %v1620_v49 = vmax.f32 %v1570_v42, 0.0  ;;  %v1622_v50 = vmax.f32 %v1611_v43, 0.0 }
 0x353   : > { %v1627_v52 = vpack.c.bf16 %v1619_v36, %v1619_v36  ;;  %v1629_v32 = vpack.c.bf16 %v1621_v45, %v1621_v45 }
 0x354   : > { %v1628_v46 = vpack.c.bf16 %v1620_v49, %v1620_v49  ;;  %v1630_v51 = vpack.c.bf16 %v1622_v50, %v1622_v50 }
 0x356   : > { %2262 = vmatprep.mubr.bf16.mxu0 %v1628_v46  ;;  %2302 = vmatprep.mubr.bf16.mxu1 %v1630_v51 }
 0x357   : > { %2263 = vmatmul.mubr.bf16.vlgmr.msra.gmra.mrb[16].mxu0 %v1627_v52  ;;  %2303 = vmatmul.mubr.bf16.vlgmr.msra.gmra.mrb[16].mxu1 %v1629_v32 }
 0x3ea   : > { %v2653_v53 = vpop.f32.mrb[12].mxu0  ;;  %v2675_v54 = vpop.f32.mrb[12].mxu1 }
 0x3eb   : > { %v2654_v48 = vpop.f32.mrb[13].mxu0  ;;  %v2676_v56 = vpop.f32.mrb[13].mxu1 }
 0x3ec   : > { %v2655_v57 = vadd.f32 %v2654_v48, %v2653_v53  ;;  %v2677_v58 = vadd.f32 %v2676_v56, %v2675_v54  ;;  %v2656_v59 = vpop.f32.mrb[14].mxu0  ;;  %v2678_v60 = vpop.f32.mrb[14].mxu1 }
 0x3ed   : > { %v2657_v61 = vpop.f32.mrb[15].mxu0  ;;  %v2679_v62 = vpop.f32.mrb[15].mxu1 }
 0x3ee   : > { %v2185_v63 = vadd.f32 %v2655_v57, %v2561_v55 }
 0x3f0   : > { %v2225_v1 = vadd.f32 %v2677_v58, %v2185_v63 }
 0x42a   : > { %v2697_v2 = vpop.f32.mrb[16].mxu0  ;;  %v2719_v3 = vpop.f32.mrb[16].mxu1 }
 0x42b   : > { %v2698_v4 = vpop.f32.mrb[17].mxu0  ;;  %v2720_v5 = vpop.f32.mrb[17].mxu1 }
 0x42c   : > { %v2699_v6 = vadd.f32 %v2698_v4, %v2697_v2  ;;  %v2721_v7 = vadd.f32 %v2720_v5, %v2719_v3  ;;  %v2700_v8 = vpop.f32.mrb[18].mxu0  ;;  %v2722_v9 = vpop.f32.mrb[18].mxu1 }
 0x42d   : > { %v2701_v10 = vpop.f32.mrb[19].mxu0  ;;  %v2723_v11 = vpop.f32.mrb[19].mxu1 }
 0x42e   : > { %v2265_v0 = vadd.f32 %v2699_v6, %v2225_v1 }
 0x430   : > { %v2305_v12 = vadd.f32 %v2721_v7, %v2265_v0 }
 0x432   : > { %2310 = vst [vmem:[%s371_s10] sm:$0xff] %v2305_v12 }
 0x433 PF: > { %s21_s30 = sadd.s32 1, %s2989_s30  }
 0x434   : > { %p18_p5 = scmp.ge.s32.totalorder %s21_s30, 5  }
 0x436   :  { %20 = sbr.rel (!%p18_p5) target bundleno = 2 (0x2), region = 99 }
 0x43d   :  { %2330 = vsyncpa [#allocation3], 1 }
 0x43e   :  { %2332 = vsyncpa [#allocation3 + $0x1], 1 }
 0x43f   :  { %2333 = vsyncpa [#allocation5], 1 }

</bundles_post_ra>
